<compile_context>
chip_gen: v7x
topology: tpu7x:2x2x1
jax: 0.10.0
libtpu: 0.0.40
codegen_flags: <defaults>
</compile_context>

<pallas_src>
import functools

import jax
import jax.numpy as jnp
from jax.experimental import pallas as pl
from jax.experimental.pallas import tpu as pltpu


# ----------------------------------------------------------------------------
# Shared tap construction: 3x3 / stride-2 / pad-1 conv (4 grouped MXU dots)
# and 2x2 / stride-2 max-pool, all in channel-major (C, M) layout with
# M = N*Ho*Wo on the lane axis.
# ----------------------------------------------------------------------------
def _conv_pool(ph_ref, w_ref, ki, kj, *, cin, wo):
    """ph_ref : (4*Cin, TM) stacked stride-2 phases [ee, eo, oe, oo].
    w_ref  : (4, Cc, 4*Cin) conv weights grouped by lane-shift amount.
    ki/kj  : (1, TM) masks, zero where a shifted tap would read the conv's
             zero padding (output row i == 0 / output col j == 0)."""
    ph = ph_ref[...]                       # (4*Cin, TM)
    tm = ph.shape[1]

    def shifted(s):
        # out[:, m] = ph[:, m - s], zero-filled at the tile start.  Tiles are
        # whole-image aligned, so every lane whose shifted source would cross
        # an image / row boundary is zeroed by ki / kj anyway.
        if s >= tm:
            return jnp.zeros_like(ph)
        pad = jnp.zeros((ph.shape[0], s), ph.dtype)
        return jnp.concatenate([pad, ph[:, :tm - s]], axis=1)

    kij = ki * kj
    # Group A: unshifted taps (1,1),(1,2),(2,1),(2,2)   -> read (i, j)
    # Group B: lane shift 1   taps (1,0),(2,0)          -> read (i, j-1)
    # Group C: lane shift Wo  taps (0,1),(0,2)          -> read (i-1, j)
    # Group D: lane shift Wo+1 tap (0,0)                -> read (i-1, j-1)
    conv = jnp.dot(w_ref[0], ph, preferred_element_type=jnp.float32)
    conv = conv + jnp.dot(w_ref[1], shifted(1) * kj,
                          preferred_element_type=jnp.float32)
    conv = conv + jnp.dot(w_ref[2], shifted(wo) * ki,
                          preferred_element_type=jnp.float32)
    conv = conv + jnp.dot(w_ref[3], shifted(wo + 1) * kij,
                          preferred_element_type=jnp.float32)
    # NOTE: conv bias intentionally dropped -- cancelled exactly by the
    # batch-mean subtraction of the train-mode BatchNorm.

    ee = ph_ref[0 * cin:1 * cin, :]
    eo = ph_ref[1 * cin:2 * cin, :]
    oe = ph_ref[2 * cin:3 * cin, :]
    oo = ph_ref[3 * cin:4 * cin, :]
    pool = jnp.maximum(jnp.maximum(ee, eo), jnp.maximum(oe, oo))
    return conv, pool


# ----------------------------------------------------------------------------
# Pass 1: per-tile BN statistics (sum and tile-mean-centered sum of squares).
# Outputs are indexed by the grid step -> fully parallel (megacore on v7x).
# ----------------------------------------------------------------------------
def _stats_kernel(ph_ref, w_ref, ki_ref, kj_ref, sum_ref, ssq_ref,
                  *, cin, cc, wo):
    conv, pool = _conv_pool(ph_ref, w_ref, ki_ref[...], kj_ref[...],
                            cin=cin, wo=wo)
    inv_tm = jnp.float32(1.0 / conv.shape[1])

    s_c = jnp.sum(conv, axis=1, keepdims=True)           # (Cc, 1)
    s_p = jnp.sum(pool, axis=1, keepdims=True)           # (Cin, 1)
    d_c = conv - s_c * inv_tm                             # centered (stable var)
    d_p = pool - s_p * inv_tm

    sum_ref[0, 0:cc, :] = s_c
    sum_ref[0, cc:, :] = s_p
    ssq_ref[0, 0:cc, :] = jnp.sum(d_c * d_c, axis=1, keepdims=True)
    ssq_ref[0, cc:, :] = jnp.sum(d_p * d_p, axis=1, keepdims=True)


# ----------------------------------------------------------------------------
# Pass 2: recompute conv + pool (no (Cout, M) intermediate round trip) and
# apply the affine BN + ReLU with lane-dense stores.
# ----------------------------------------------------------------------------
def _apply_kernel(ph_ref, w_ref, ki_ref, kj_ref, scale_ref, shift_ref, o_ref,
                  *, cin, cc, wo):
    conv, pool = _conv_pool(ph_ref, w_ref, ki_ref[...], kj_ref[...],
                            cin=cin, wo=wo)
    o_ref[0:cc, :] = jnp.maximum(conv * scale_ref[0:cc, :] + shift_ref[0:cc, :],
                                 0.0)
    o_ref[cc:, :] = jnp.maximum(pool * scale_ref[cc:, :] + shift_ref[cc:, :],
                                0.0)


def _choose_m_tile(m, img_len, target, cap=16 * 1024):
    """Largest whole-image-aligned, 128-multiple lane tile <= min(target, cap)."""
    n_img = m // img_len
    cands = [k * img_len for k in range(1, n_img + 1)
             if m % (k * img_len) == 0 and (k * img_len) % 128 == 0]
    if not cands:
        return m                          # tiny / odd M: one full-M tile
    limit = min(target, cap)
    under = [t for t in cands if t <= limit]
    if under:
        return max(under)
    # TODO(synk): for very large single images (Ho*Wo > cap) switch to
    # output-row tiling with a one-row halo; take the smallest image-aligned
    # tile for now.
    return min(cands)


def downsampler_block(x_nchw, w_oihw, bias, gamma, beta, *, eps=1e-3,
                      m_tile_target=8192):
    """DownsamplerBlock forward: concat(conv3x3/s2, maxpool2x2) -> BN -> ReLU."""
    # Conv bias is a no-op through train-mode BN (the batch mean cancels it).
    del bias
    N, Cin, H, W = x_nchw.shape
    assert H % 2 == 0 and W % 2 == 0, "DownsamplerBlock expects even H, W"
    Cc = w_oihw.shape[0]                  # conv output channels = noutput - ninput
    Cout = Cc + Cin
    Ho, Wo = H // 2, W // 2
    L = Ho * Wo
    M = N * L

    # Single fused layout pass: (N,Cin,H,W) -> stacked stride-2 phases
    # (4*Cin, M), phase order [ee, eo, oe, oo] (row parity major).
    xr = x_nchw.astype(jnp.float32).reshape(N, Cin, Ho, 2, Wo, 2)
    phases = jnp.transpose(xr, (3, 5, 1, 0, 2, 4)).reshape(4 * Cin, M)

    # Conv weights (Cc, Cin, 3, 3) regrouped by lane-shift amount into
    # (4, Cc, 4*Cin); unused phase slots of a group are zero.
    w = w_oihw.astype(jnp.float32)
    z = jnp.zeros((Cc, Cin), jnp.float32)
    wa = jnp.concatenate([w[:, :, 1, 1], w[:, :, 1, 2],
                          w[:, :, 2, 1], w[:, :, 2, 2]], axis=1)
    wb = jnp.concatenate([z, w[:, :, 1, 0], z, w[:, :, 2, 0]], axis=1)
    wc = jnp.concatenate([z, z, w[:, :, 0, 1], w[:, :, 0, 2]], axis=1)
    wd = jnp.concatenate([z, z, z, w[:, :, 0, 0]], axis=1)
    w_groups = jnp.stack([wa, wb, wc, wd])                # (4, Cc, 4*Cin)

    tile_m = _choose_m_tile(M, L, m_tile_target)
    n_tiles = M // tile_m

    # Boundary "keep" masks (identical for every image-aligned tile).
    lane = jnp.arange(tile_m, dtype=jnp.int32)
    keep_j = (lane % Wo != 0).astype(jnp.float32).reshape(1, tile_m)
    keep_i = (lane % L >= Wo).astype(jnp.float32).reshape(1, tile_m)

    ph_spec = pl.BlockSpec((4 * Cin, tile_m), lambda k: (0, k))
    w_spec = pl.BlockSpec((4, Cc, 4 * Cin), lambda k: (0, 0, 0))
    mask_spec = pl.BlockSpec((1, tile_m), lambda k: (0, 0))
    vec_spec = pl.BlockSpec((Cout, 1), lambda k: (0, 0))
    cparams = pltpu.CompilerParams(
        dimension_semantics=("parallel",),
        vmem_limit_bytes=32 * 1024 * 1024)

    # ---- Pass 1: per-tile statistics ---------------------------------------
    psum, pssq = pl.pallas_call(
        functools.partial(_stats_kernel, cin=Cin, cc=Cc, wo=Wo),
        out_shape=(jax.ShapeDtypeStruct((n_tiles, Cout, 1), jnp.float32),
                   jax.ShapeDtypeStruct((n_tiles, Cout, 1), jnp.float32)),
        grid=(n_tiles,),
        in_specs=[ph_spec, w_spec, mask_spec, mask_spec],
        out_specs=(pl.BlockSpec((1, Cout, 1), lambda k: (k, 0, 0)),
                   pl.BlockSpec((1, Cout, 1), lambda k: (k, 0, 0))),
        compiler_params=cparams,
    )(phases, w_groups, keep_i, keep_j)

    # ---- Finalize batch statistics (O(n_tiles * Cout) -> plain JAX) --------
    cnt = jnp.float32(tile_m)
    inv_m = jnp.float32(1.0 / M)
    total_sum = jnp.sum(psum, axis=0)                      # (Cout, 1)
    mean = total_sum * inv_m
    mu_k = psum / cnt                                      # (n_tiles, Cout, 1)
    # Chan et al. parallel variance combine (numerically stable).
    m2 = jnp.sum(pssq, axis=0) + cnt * jnp.sum((mu_k - mean) ** 2, axis=0)
    var = jnp.maximum(m2 * inv_m, 0.0)                     # biased, train BN
    scale = gamma.reshape(Cout, 1).astype(jnp.float32) * jax.lax.rsqrt(var + eps)
    shift = beta.reshape(Cout, 1).astype(jnp.float32) - mean * scale

    # ---- Pass 2: recompute conv+pool, apply BN + ReLU -----------------------
    # TODO(synk): keep the output channel-major / bf16 if the consumer allows;
    # the NCHW f32 contract of the PyTorch module is preserved here.
    out_cm = pl.pallas_call(
        functools.partial(_apply_kernel, cin=Cin, cc=Cc, wo=Wo),
        out_shape=jax.ShapeDtypeStruct((Cout, M), jnp.float32),
        grid=(n_tiles,),
        in_specs=[ph_spec, w_spec, mask_spec, mask_spec, vec_spec, vec_spec],
        out_specs=pl.BlockSpec((Cout, tile_m), lambda k: (0, k)),
        compiler_params=cparams,
    )(phases, w_groups, keep_i, keep_j, scale, shift)

    out = out_cm.reshape(Cout, N, Ho, Wo)
    return jnp.transpose(out, (1, 0, 2, 3))                # back to NCHW


def init_encoder_params(key, in_channels):
    """Deterministic synthetic parameters for Encoder.initial (kaiming-style)."""
    noutput = 16                          # DownsamplerBlock(in_channels, 16)
    cc = noutput - in_channels
    fan_in = in_channels * 3 * 3
    kw, kb = jax.random.split(key)
    conv_w = jax.random.normal(kw, (cc, in_channels, 3, 3), jnp.float32) * \
        jnp.sqrt(2.0 / fan_in)
    conv_b = 0.1 * jax.random.normal(kb, (cc,), jnp.float32)
    bn_gamma = jnp.ones((noutput,), jnp.float32)
    bn_beta = jnp.zeros((noutput,), jnp.float32)
    return {"conv_w": conv_w, "conv_b": conv_b,
            "bn_gamma": bn_gamma, "bn_beta": bn_beta}


def encoder_forward(x_nchw, params):
    """Encoder.forward(input, predict=False) -> (low_level, high_level)."""
    feature = downsampler_block(x_nchw, params["conv_w"], params["conv_b"],
                                params["bn_gamma"], params["bn_beta"], eps=1e-3)
    # TODO(synk): MobileNetV3_Large.bneck[0:3] / bneck[3:] are an external
    # pretrained model not defined in the source; the initial-block feature is
    # returned for both outputs, so the 160-channel SCModule enhancer and the
    # Decoder (which consume those features) are not run.
    # TODO(synk): the predict=True branch calls .size() on a bool and is
    # dead/buggy in the reference; not implemented.
    low_level_features = feature
    high_level_features = feature
    return low_level_features, high_level_features


def _reference_downsampler(x, w, b, gamma, beta, eps=1e-3):
    """Pure-JAX reference of the DownsamplerBlock forward (train-mode BN)."""
    conv = jax.lax.conv_general_dilated(
        x, w, window_strides=(2, 2), padding=((1, 1), (1, 1)),
        dimension_numbers=("NCHW", "OIHW", "NCHW")) + b[None, :, None, None]
    pool = jax.lax.reduce_window(x, -jnp.inf, jax.lax.max,
                                 (1, 1, 2, 2), (1, 1, 2, 2), "VALID")
    out = jnp.concatenate([conv, pool], axis=1)
    mean = jnp.mean(out, axis=(0, 2, 3), keepdims=True)
    var = jnp.var(out, axis=(0, 2, 3), keepdims=True)
    y = (out - mean) * jax.lax.rsqrt(var + eps) * gamma[None, :, None, None] \
        + beta[None, :, None, None]
    return jnp.maximum(y, 0.0)


if __name__ == "__main__":
    key = jax.random.PRNGKey(0)
    k_x, k_p, k_x2 = jax.random.split(key, 3)

    in_channels = 4
    x = jax.random.normal(k_x, (2, in_channels, 16, 16), jnp.float32)  # NCHW
    params = init_encoder_params(k_p, in_channels)

    low, high = jax.block_until_ready(encoder_forward(x, params))

    ref = _reference_downsampler(x, params["conv_w"], params["conv_b"],
                                 params["bn_gamma"], params["bn_beta"])
    assert low.shape == (2, 16, 8, 8) and high.shape == (2, 16, 8, 8)
    assert jnp.allclose(low, ref, rtol=1e-3, atol=1e-3), \
        float(jnp.max(jnp.abs(low - ref)))

    # Multi-tile grid (small tile target -> 2 image-aligned tiles) exercising
    # the per-tile stats combine; the +3 offset stresses the centered-variance
    # accumulation with un-normalized inputs.
    x2 = 3.0 + jax.random.normal(k_x2, (2, in_channels, 32, 32), jnp.float32)
    y2 = jax.block_until_ready(
        downsampler_block(x2, params["conv_w"], params["conv_b"],
                          params["bn_gamma"], params["bn_beta"],
                          eps=1e-3, m_tile_target=256))
    ref2 = _reference_downsampler(x2, params["conv_w"], params["conv_b"],
                                  params["bn_gamma"], params["bn_beta"])
    assert y2.shape == (2, 16, 16, 16)
    assert jnp.allclose(y2, ref2, rtol=1e-3, atol=1e-3), \
        float(jnp.max(jnp.abs(y2 - ref2)))

    # Full-M fallback tile (M = 64 < 128 lanes).
    x3 = jax.random.normal(k_x, (1, in_channels, 16, 16), jnp.float32)
    y3 = jax.block_until_ready(
        downsampler_block(x3, params["conv_w"], params["conv_b"],
                          params["bn_gamma"], params["bn_beta"], eps=1e-3))
    ref3 = _reference_downsampler(x3, params["conv_w"], params["conv_b"],
                                  params["bn_gamma"], params["bn_beta"])
    assert jnp.allclose(y3, ref3, rtol=1e-3, atol=1e-3), \
        float(jnp.max(jnp.abs(y3 - ref3)))

    print("KERNEL_OK")
</pallas_src>

<mosaic_0001>
module attributes {stable_mosaic.version = 11 : i64} {
  func.func @_stats_kernel(%arg0: i32, %arg1: memref<16x128xf32, #tpu.memory_space<vmem>>, %arg2: memref<4x12x16xf32, #tpu.memory_space<vmem>>, %arg3: memref<1x128xf32, #tpu.memory_space<vmem>>, %arg4: memref<1x128xf32, #tpu.memory_space<vmem>>, %arg5: memref<1x16x1xf32, #tpu.memory_space<vmem>>, %arg6: memref<1x16x1xf32, #tpu.memory_space<vmem>>) attributes {dimension_semantics = [#tpu.dimension_semantics<parallel>], iteration_bounds = array<i64: 1>, scalar_prefetch = 0 : i64, scratch_operands = 0 : i64, tpu.core_type = #tpu.core_type<tc>, window_params = [{transform_indices = @transform_0, window_bounds = array<i64: 16, 128>}, {pipeline_mode = #tpu.pipeline_mode<synchronous>, transform_indices = @transform_1, window_bounds = array<i64: 4, 12, 16>}, {pipeline_mode = #tpu.pipeline_mode<synchronous>, transform_indices = @transform_2, window_bounds = array<i64: 1, 128>}, {pipeline_mode = #tpu.pipeline_mode<synchronous>, transform_indices = @transform_3, window_bounds = array<i64: 1, 128>}, {transform_indices = @transform_4, window_bounds = array<i64: 1, 16, 1>}, {transform_indices = @transform_5, window_bounds = array<i64: 1, 16, 1>}]} {
    %c0 = arith.constant 0 : index
    %c0_0 = arith.constant 0 : index
    %0 = vector.load %arg3[%c0, %c0_0] : memref<1x128xf32, #tpu.memory_space<vmem>>, vector<1x128xf32>
    %c0_1 = arith.constant 0 : index
    %c0_2 = arith.constant 0 : index
    %1 = vector.load %arg4[%c0_1, %c0_2] : memref<1x128xf32, #tpu.memory_space<vmem>>, vector<1x128xf32>
    %c0_3 = arith.constant 0 : index
    %c0_4 = arith.constant 0 : index
    %2 = vector.load %arg1[%c0_3, %c0_4] : memref<16x128xf32, #tpu.memory_space<vmem>>, vector<16x128xf32>
    %3 = arith.mulf %0, %1 : vector<1x128xf32>
    %c0_5 = arith.constant 0 : index
    %c0_6 = arith.constant 0 : index
    %c0_7 = arith.constant 0 : index
    %4 = vector.load %arg2[%c0_5, %c0_6, %c0_7] : memref<4x12x16xf32, #tpu.memory_space<vmem>>, vector<1x12x16xf32>
    %5 = vector.shape_cast %4 : vector<1x12x16xf32> to vector<12x16xf32>
    %cst = arith.constant dense<0.000000e+00> : vector<12x128xf32>
    %6 = tpu.matmul %5, %2, %cst {dimension_numbers = #tpu.dot_dimension_numbers<[1], [0], [0], [1], [0, 0, 1, 1], [], []>} : vector<12x16xf32>, vector<16x128xf32>, vector<12x128xf32> -> vector<12x128xf32>
    %c1 = arith.constant 1 : index
    %c0_8 = arith.constant 0 : index
    %c0_9 = arith.constant 0 : index
    %7 = vector.load %arg2[%c1, %c0_8, %c0_9] : memref<4x12x16xf32, #tpu.memory_space<vmem>>, vector<1x12x16xf32>
    %8 = vector.shape_cast %7 : vector<1x12x16xf32> to vector<12x16xf32>
    %cst_10 = arith.constant 0.000000e+00 : f32
    %9 = vector.broadcast %cst_10 : f32 to vector<16x1xf32>
    %10 = vector.extract_strided_slice %2 {offsets = [0, 0], sizes = [16, 127], strides = [1, 1]} : vector<16x128xf32> to vector<16x127xf32>
    %11 = tpu.concatenate %9, %10 in 1 : vector<16x1xf32>, vector<16x127xf32> -> vector<16x128xf32>
    %12 = vector.broadcast %1 : vector<1x128xf32> to vector<16x128xf32>
    %13 = arith.mulf %11, %12 : vector<16x128xf32>
    %cst_11 = arith.constant dense<0.000000e+00> : vector<12x128xf32>
    %14 = tpu.matmul %8, %13, %cst_11 {dimension_numbers = #tpu.dot_dimension_numbers<[1], [0], [0], [1], [0, 0, 1, 1], [], []>} : vector<12x16xf32>, vector<16x128xf32>, vector<12x128xf32> -> vector<12x128xf32>
    %15 = arith.addf %6, %14 : vector<12x128xf32>
    %c2 = arith.constant 2 : index
    %c0_12 = arith.constant 0 : index
    %c0_13 = arith.constant 0 : index
    %16 = vector.load %arg2[%c2, %c0_12, %c0_13] : memref<4x12x16xf32, #tpu.memory_space<vmem>>, vector<1x12x16xf32>
    %17 = vector.shape_cast %16 : vector<1x12x16xf32> to vector<12x16xf32>
    %cst_14 = arith.constant 0.000000e+00 : f32
    %18 = vector.broadcast %cst_14 : f32 to vector<16x8xf32>
    %19 = vector.extract_strided_slice %2 {offsets = [0, 0], sizes = [16, 120], strides = [1, 1]} : vector<16x128xf32> to vector<16x120xf32>
    %20 = tpu.concatenate %18, %19 in 1 : vector<16x8xf32>, vector<16x120xf32> -> vector<16x128xf32>
    %21 = vector.broadcast %0 : vector<1x128xf32> to vector<16x128xf32>
    %22 = arith.mulf %20, %21 : vector<16x128xf32>
    %cst_15 = arith.constant dense<0.000000e+00> : vector<12x128xf32>
    %23 = tpu.matmul %17, %22, %cst_15 {dimension_numbers = #tpu.dot_dimension_numbers<[1], [0], [0], [1], [0, 0, 1, 1], [], []>} : vector<12x16xf32>, vector<16x128xf32>, vector<12x128xf32> -> vector<12x128xf32>
    %24 = arith.addf %15, %23 : vector<12x128xf32>
    %c3 = arith.constant 3 : index
    %c0_16 = arith.constant 0 : index
    %c0_17 = arith.constant 0 : index
    %25 = vector.load %arg2[%c3, %c0_16, %c0_17] : memref<4x12x16xf32, #tpu.memory_space<vmem>>, vector<1x12x16xf32>
    %26 = vector.shape_cast %25 : vector<1x12x16xf32> to vector<12x16xf32>
    %cst_18 = arith.constant 0.000000e+00 : f32
    %27 = vector.broadcast %cst_18 : f32 to vector<16x9xf32>
    %28 = vector.extract_strided_slice %2 {offsets = [0, 0], sizes = [16, 119], strides = [1, 1]} : vector<16x128xf32> to vector<16x119xf32>
    %29 = tpu.concatenate %27, %28 in 1 : vector<16x9xf32>, vector<16x119xf32> -> vector<16x128xf32>
    %30 = vector.broadcast %3 : vector<1x128xf32> to vector<16x128xf32>
    %31 = arith.mulf %29, %30 : vector<16x128xf32>
    %cst_19 = arith.constant dense<0.000000e+00> : vector<12x128xf32>
    %32 = tpu.matmul %26, %31, %cst_19 {dimension_numbers = #tpu.dot_dimension_numbers<[1], [0], [0], [1], [0, 0, 1, 1], [], []>} : vector<12x16xf32>, vector<16x128xf32>, vector<12x128xf32> -> vector<12x128xf32>
    %33 = arith.addf %24, %32 : vector<12x128xf32>
    %c0_20 = arith.constant 0 : index
    %c0_21 = arith.constant 0 : index
    %34 = vector.load %arg1[%c0_20, %c0_21] : memref<16x128xf32, #tpu.memory_space<vmem>>, vector<4x128xf32>
    %c4 = arith.constant 4 : index
    %c0_22 = arith.constant 0 : index
    %35 = vector.load %arg1[%c4, %c0_22] : memref<16x128xf32, #tpu.memory_space<vmem>>, vector<4x128xf32>
    %c8 = arith.constant 8 : index
    %c0_23 = arith.constant 0 : index
    %36 = vector.load %arg1[%c8, %c0_23] : memref<16x128xf32, #tpu.memory_space<vmem>>, vector<4x128xf32>
    %c12 = arith.constant 12 : index
    %c0_24 = arith.constant 0 : index
    %37 = vector.load %arg1[%c12, %c0_24] : memref<16x128xf32, #tpu.memory_space<vmem>>, vector<4x128xf32>
    %38 = arith.maximumf %34, %35 : vector<4x128xf32>
    %39 = arith.maximumf %36, %37 : vector<4x128xf32>
    %40 = arith.maximumf %38, %39 : vector<4x128xf32>
    %cst_25 = arith.constant dense<0.000000e+00> : vector<12xf32>
    %41 = vector.multi_reduction <add>, %33, %cst_25 [1] : vector<12x128xf32> to vector<12xf32>
    %42 = vector.shape_cast %41 : vector<12xf32> to vector<12x1xf32>
    %cst_26 = arith.constant dense<0.000000e+00> : vector<4xf32>
    %43 = vector.multi_reduction <add>, %40, %cst_26 [1] : vector<4x128xf32> to vector<4xf32>
    %44 = vector.shape_cast %43 : vector<4xf32> to vector<4x1xf32>
    %cst_27 = arith.constant 7.812500e-03 : f32
    %45 = vector.broadcast %cst_27 : f32 to vector<12x1xf32>
    %46 = arith.mulf %42, %45 : vector<12x1xf32>
    %47 = vector.broadcast %46 : vector<12x1xf32> to vector<12x128xf32>
    %48 = arith.subf %33, %47 : vector<12x128xf32>
    %cst_28 = arith.constant 7.812500e-03 : f32
    %49 = vector.broadcast %cst_28 : f32 to vector<4x1xf32>
    %50 = arith.mulf %44, %49 : vector<4x1xf32>
    %51 = vector.broadcast %50 : vector<4x1xf32> to vector<4x128xf32>
    %52 = arith.subf %40, %51 : vector<4x128xf32>
    %c0_29 = arith.constant 0 : index
    %c0_30 = arith.constant 0 : index
    %c0_31 = arith.constant 0 : index
    %53 = vector.load %arg5[%c0_29, %c0_30, %c0_31] : memref<1x16x1xf32, #tpu.memory_space<vmem>>, vector<1x12x1xf32>
    %54 = vector.shape_cast %53 : vector<1x12x1xf32> to vector<12x1xf32>
    %55 = vector.shape_cast %42 : vector<12x1xf32> to vector<1x12x1xf32>
    tpu.vector_store %arg5[%c0_29, %c0_30, %c0_31], %55 {strides = array<i32>} : memref<1x16x1xf32, #tpu.memory_space<vmem>>, vector<1x12x1xf32>,
    %c0_32 = arith.constant 0 : index
    %c12_33 = arith.constant 12 : index
    %c0_34 = arith.constant 0 : index
    %56 = vector.load %arg5[%c0_32, %c12_33, %c0_34] : memref<1x16x1xf32, #tpu.memory_space<vmem>>, vector<1x4x1xf32>
    %57 = vector.shape_cast %56 : vector<1x4x1xf32> to vector<4x1xf32>
    %58 = vector.shape_cast %44 : vector<4x1xf32> to vector<1x4x1xf32>
    tpu.vector_store %arg5[%c0_32, %c12_33, %c0_34], %58 {strides = array<i32>} : memref<1x16x1xf32, #tpu.memory_space<vmem>>, vector<1x4x1xf32>,
    %59 = arith.mulf %48, %48 : vector<12x128xf32>
    %cst_35 = arith.constant dense<0.000000e+00> : vector<12xf32>
    %60 = vector.multi_reduction <add>, %59, %cst_35 [1] : vector<12x128xf32> to vector<12xf32>
    %61 = vector.shape_cast %60 : vector<12xf32> to vector<12x1xf32>
    %c0_36 = arith.constant 0 : index
    %c0_37 = arith.constant 0 : index
    %c0_38 = arith.constant 0 : index
    %62 = vector.load %arg6[%c0_36, %c0_37, %c0_38] : memref<1x16x1xf32, #tpu.memory_space<vmem>>, vector<1x12x1xf32>
    %63 = vector.shape_cast %62 : vector<1x12x1xf32> to vector<12x1xf32>
    %64 = vector.shape_cast %61 : vector<12x1xf32> to vector<1x12x1xf32>
    tpu.vector_store %arg6[%c0_36, %c0_37, %c0_38], %64 {strides = array<i32>} : memref<1x16x1xf32, #tpu.memory_space<vmem>>, vector<1x12x1xf32>,
    %65 = arith.mulf %52, %52 : vector<4x128xf32>
    %cst_39 = arith.constant dense<0.000000e+00> : vector<4xf32>
    %66 = vector.multi_reduction <add>, %65, %cst_39 [1] : vector<4x128xf32> to vector<4xf32>
    %67 = vector.shape_cast %66 : vector<4xf32> to vector<4x1xf32>
    %c0_40 = arith.constant 0 : index
    %c12_41 = arith.constant 12 : index
    %c0_42 = arith.constant 0 : index
    %68 = vector.load %arg6[%c0_40, %c12_41, %c0_42] : memref<1x16x1xf32, #tpu.memory_space<vmem>>, vector<1x4x1xf32>
    %69 = vector.shape_cast %68 : vector<1x4x1xf32> to vector<4x1xf32>
    %70 = vector.shape_cast %67 : vector<4x1xf32> to vector<1x4x1xf32>
    tpu.vector_store %arg6[%c0_40, %c12_41, %c0_42], %70 {strides = array<i32>} : memref<1x16x1xf32, #tpu.memory_space<vmem>>, vector<1x4x1xf32>,
    return
  }
  func.func @transform_0(%arg0: i32) -> (i32, i32) {
    %c0_i32 = arith.constant 0 : i32
    %c0_i32_0 = arith.constant 0 : i32
    return %c0_i32, %arg0 : i32, i32
  }
  func.func @transform_1(%arg0: i32) -> (i32, i32, i32) {
    %c0_i32 = arith.constant 0 : i32
    %c0_i32_0 = arith.constant 0 : i32
    %c0_i32_1 = arith.constant 0 : i32
    %c0_i32_2 = arith.constant 0 : i32
    return %c0_i32, %c0_i32_0, %c0_i32_1 : i32, i32, i32
  }
  func.func @transform_2(%arg0: i32) -> (i32, i32) {
    %c0_i32 = arith.constant 0 : i32
    %c0_i32_0 = arith.constant 0 : i32
    %c0_i32_1 = arith.constant 0 : i32
    return %c0_i32, %c0_i32_0 : i32, i32
  }
  func.func @transform_3(%arg0: i32) -> (i32, i32) {
    %c0_i32 = arith.constant 0 : i32
    %c0_i32_0 = arith.constant 0 : i32
    %c0_i32_1 = arith.constant 0 : i32
    return %c0_i32, %c0_i32_0 : i32, i32
  }
  func.func @transform_4(%arg0: i32) -> (i32, i32, i32) {
    %c0_i32 = arith.constant 0 : i32
    %c0_i32_0 = arith.constant 0 : i32
    %c0_i32_1 = arith.constant 0 : i32
    return %arg0, %c0_i32, %c0_i32_0 : i32, i32, i32
  }
  func.func @transform_5(%arg0: i32) -> (i32, i32, i32) {
    %c0_i32 = arith.constant 0 : i32
    %c0_i32_0 = arith.constant 0 : i32
    %c0_i32_1 = arith.constant 0 : i32
    return %arg0, %c0_i32, %c0_i32_0 : i32, i32, i32
  }
}

</mosaic_0001>

<bundles_post_ra>
// kernel: tpu_custom_call.1
= control target key start
LH: loop header
LB: loop body
LE: loop exit
PB: predicated region body
PF: predicated region fallthrough
CT: control target
= control target key end

     0   :  { %vm48_vm0 = vcmask 130048   ;;  %s548_s22 = smov 8   ;;  %s549_s23 = smov 1   ;;  %v41_v5 = vlaneseq  ;;  %vm220_vm1 = vcmask 64512   ;;  %vm37_vm2 = vcmask 7168   ;;  %s667_s0 = inlined_call_operand.vmem [shape: f32[16,128], index: 0, kind: input, shape index: {}]   ;;  %s668_s1 = inlined_call_operand.vmem [shape: f32[4,12,16], index: 1, kind: input, shape index: {}]   ;;  %s669_s2 = inlined_call_operand.vmem [shape: f32[1,128], index: 2, kind: input, shape index: {}]   ;;  %s670_s3 = inlined_call_operand.vmem [shape: f32[1,128], index: 3, kind: input, shape index: {}]   ;;  %s671_s4 = inlined_call_operand.vmem [shape: f32[1,16,1], index: 4, kind: output, shape index: {0}]   ;;  %s672_s5 = inlined_call_operand.vmem [shape: f32[1,16,1], index: 5, kind: output, shape index: {1}]  }
   0x1   :  { %v21_v0 = vld [vmem:[%s667_s0] sm:$0xff]  ;;  %v22_v1 = vld [vmem:[%s667_s0 + $0x8] sm:$0xff]  ;;  %v465_v2 = vld [vmem:[%s668_s1 + $0x10] sm:$0xff]  ;;  %s550_s28 = smov 9   ;;  %vm323_vm3 = vcmask 72704   ;;  %vm426_vm4 = vcmask 1043456  }
   0x2   :  { %214 = vrot.lane.b32.xlu1 %v21_v0, %s548_s22  ;;  %31 = vrot.lane.b32.xlu0 %v21_v0, %s549_s23  ;;  %v527_v3 = vpack.c.bf16 %v22_v1, %v21_v0  ;;  %v471_v4 = vld [vmem:[%s668_s1 + $0x20] sm:$0xff]  ;;  %v42_v6 = vshrl.u32 %v41_v5, 7  ;;  %v466_v34 = vld [vmem:[%s668_s1 + $0x18] sm:$0xf]  ;;  %vm440_vm5 = vcmask 3072  }
   0x3   :  { %499 = vmatprep.mubr.msk.f32.mxu1 %vm48_vm0, %v465_v2  ;;  %513 = vmatprep.mubr.msk.f32.mxu0 %vm48_vm0, %v471_v4  ;;  %v19_v8 = vld [vmem:[%s669_s2] sm:$0x1]  ;;  %v472_v35 = vld [vmem:[%s668_s1 + $0x28] sm:$0xf]  ;;  %v475_v38 = vld [vmem:[%s668_s1 + $0x30] sm:$0xff] }
   0x4   :  { %v43_v7 = vsub.s32 0, %v42_v6  ;;  %v20_v9 = vld [vmem:[%s670_s3] sm:$0x1]  ;;  %v25_v39 = vld [vmem:[%s668_s1 + $0x8] sm:$0xf] }
   0x5   :  { %v23_v12 = vmul.f32 %v20_v9, %v19_v8  ;;  %v24_v37 = vld [vmem:[%s668_s1] sm:$0xff]  ;;  %v476_v40 = vld [vmem:[%s668_s1 + $0x38] sm:$0xf]  ;;  %v419_v43 = vld [vmem:[%s667_s0 + $0x8] sm:$0xf] }
   0x6   :  { %216 = vrot.lane.b32.xlu1 %v22_v1, %s548_s22  ;;  %33 = vrot.lane.b32.xlu0 %v22_v1, %s549_s23  ;;  %v227_v13 = vrot.slane %v19_v8, %v43_v7  ;;  %v44_v14 = vrot.slane %v20_v9, %v43_v7  ;;  %v417_v41 = vld [vmem:[%s667_s0] sm:$0xf]  ;;  %v418_v42 = vld [vmem:[%s667_s0 + $0x4] sm:$0xf] }
   0x7   :  { %v330_v21 = vrot.slane %v23_v12, %v43_v7  ;;  %v420_v44 = vld [vmem:[%s667_s0 + $0xc] sm:$0xf]  ;;  %v421_v45 = vmax.f32 %v417_v41, %v418_v42 }
   0x8   :  { %v422_v46 = vmax.f32 %v419_v43, %v420_v44 }
   0xa   :  { %319 = vrot.lane.b32.xlu1 %v22_v1, %s550_s28  ;;  %317 = vrot.lane.b32.xlu0 %v21_v0, %s550_s28  ;;  %v423_v47 = vmax.f32 %v421_v45, %v422_v46 }
   0xc   :  { %v430_v48 = vsel %vm426_vm4, %v423_v47, 0.0 }
  0x2e   :  { %431 = vadd.xlane.f32.xlu1 %v430_v48 }
  0x74   :  { %v215_v10 = vpop.permute.xlu1 %214  ;;  %v32_v11 = vpop.permute.xlu0 %31 }
  0x75   :  { %v221_v15 = vsel %vm220_vm1, 0.0, %v215_v10  ;;  %v38_v16 = vsel %vm37_vm2, 0.0, %v32_v11 }
  0x76   :  { %v229_v22 = vmul.f32 %v227_v13, %v221_v15  ;;  %v46_v23 = vmul.f32 %v44_v14, %v38_v16 }
  0x78   :  { %v217_v17 = vpop.permute.xlu1 %216  ;;  %v34_v18 = vpop.permute.xlu0 %33 }
  0x79   :  { %v222_v19 = vsel %vm220_vm1, 0.0, %v217_v17  ;;  %v39_v20 = vsel %vm37_vm2, 0.0, %v34_v18 }
  0x7a   :  { %v230_v24 = vmul.f32 %v227_v13, %v222_v19  ;;  %v47_v25 = vmul.f32 %v44_v14, %v39_v20 }
  0x7c   :  { %v320_v26 = vpop.permute.xlu1 %319  ;;  %v318_v27 = vpop.permute.xlu0 %317  ;;  %v523_v28 = vpack.c.bf16 %v47_v25, %v46_v23  ;;  %v531_v29 = vpack.c.bf16 %v230_v24, %v229_v22 }
  0x7d   :  { %v325_v30 = vsel %vm323_vm3, 0.0, %v320_v26  ;;  %v324_v31 = vsel %vm323_vm3, 0.0, %v318_v27 }
  0x7e   :  { %v333_v32 = vmul.f32 %v330_v21, %v325_v30  ;;  %v332_v33 = vmul.f32 %v330_v21, %v324_v31  ;;  %524 = vmatprep.subr.bf16.mxu1 %v523_v28  ;;  %532 = vmatprep.subr.bf16.mxu0 %v531_v29 }
  0x7f   :  { %526 = vmatpush3.bf16.msra.mxu1 %v523_v28  ;;  %534 = vmatpush3.bf16.msra.mxu0 %v531_v29 }
  0x80   :  { %v535_v36 = vpack.c.bf16 %v333_v32, %v332_v33  ;;  %528 = vmatprep.subr.bf16.mxu1 %v527_v3 }
  0x82   :  { %500 = vmatmul.mubr.msk.f32.vlgmr.msra.gmra.mrb[0].mxu1 %vm48_vm0, %v466_v34  ;;  %514 = vmatmul.mubr.msk.f32.vlgmr.msra.gmra.mrb[0].mxu0 %vm48_vm0, %v472_v35 }
  0x83   :  { %536 = vmatprep.subr.bf16.mxu0 %v535_v36  ;;  %530 = vmatpush3.bf16.msra.mxu1 %v527_v3 }
  0x84   :  { %538 = vmatpush3.bf16.msra.mxu0 %v535_v36  ;;  %506 = vmatprep.mubr.msk.f32.mxu1 %vm48_vm0, %v24_v37 }
  0x85   :  { %520 = vmatprep.mubr.msk.f32.mxu0 %vm48_vm0, %v475_v38 }
  0x8a   :  { %507 = vmatmul.mubr.msk.f32.vlgmr.msra.gmra.mrb[0].mxu1 %vm48_vm0, %v25_v39  ;;  %521 = vmatmul.mubr.msk.f32.vlgmr.msra.gmra.mrb[0].mxu0 %vm48_vm0, %v476_v40 }
  0xbb   :  { %v432_v56 = vpop.xlane.xlu1 %431 }
  0xbc   :  { %442 = vst.msk [vmem:[%s671_s4 + $0xc] sm:$0xf] %vm440_vm5, %v432_v56  ;;  %v437_v58 = vmul.f32 0.0078125, %v432_v56 }
  0xbe   :  { %v438_v62 = vsub.f32 %v423_v47, %v437_v58 }
  0xc0   :  { %v452_v3 = vmul.f32 %v438_v62, %v438_v62 }
  0xc2   :  { %v453_v5 = vsel %vm426_vm4, %v452_v3, 0.0 }
 0x15d   :  { %v508_v49 = vpop.f32.mrb[0].mxu1  ;;  %v522_v50 = vpop.f32.mrb[0].mxu0 }
 0x15e   :  { %v539_v51 = vadd.f32 %v522_v50, %v508_v49  ;;  %v202_v52 = vpop.f32.mrb[1].mxu1  ;;  %v406_v53 = vpop.f32.mrb[1].mxu0 }
 0x15f   :  { %v540_v54 = vadd.f32 %v406_v53, %v202_v52 }
 0x160   :  { %v427_v55 = vsel %vm426_vm4, %v539_v51, 0.0 }
 0x161   :  { %428 = vadd.xlane.f32.xlu0 %v427_v55 }
 0x165   :  { %424 = vadd.xlane.f32.xlu0 %v540_v54 }
 0x1ee   :  { %v429_v57 = vpop.xlane.xlu0 %428 }
 0x1ef   :  { %v434_v59 = vmul.f32 0.0078125, %v429_v57  ;;  %441 = vst.msk [vmem:[%s671_s4 + $0x8] sm:$0xf] %vm440_vm5, %v429_v57 }
 0x1f1   :  { %v436_v60 = vsub.f32 %v539_v51, %v434_v59 }
 0x1f2   :  { %v425_v61 = vpop.xlane.xlu0 %424 }
 0x1f3   :  { %v433_v63 = vmul.f32 0.0078125, %v425_v61  ;;  %439 = vst.msk [vmem:[%s671_s4] sm:$0xff] %vm37_vm2, %v425_v61  ;;  %v444_v0 = vmul.f32 %v436_v60, %v436_v60 }
 0x1f5   :  { %v447_v1 = vsel %vm426_vm4, %v444_v0, 0.0  ;;  %v435_v2 = vsub.f32 %v540_v54, %v433_v63 }
 0x1f6   :  { %448 = vadd.xlane.f32.xlu1 %v447_v1 }
 0x1f7   :  { %v443_v4 = vmul.f32 %v435_v2, %v435_v2 }
 0x1f9   :  { %445 = vadd.xlane.f32.xlu0 %v443_v4 }
 0x1fd   :  { %454 = vadd.xlane.f32.xlu0 %v453_v5 }
 0x283   :  { %v449_v6 = vpop.xlane.xlu1 %448 }
 0x284   :  { %451 = vst.msk [vmem:[%s672_s5 + $0x8] sm:$0xf] %vm440_vm5, %v449_v6 }
 0x286   :  { %v446_v7 = vpop.xlane.xlu0 %445 }
 0x287   :  { %450 = vst.msk [vmem:[%s672_s5] sm:$0xff] %vm37_vm2, %v446_v7 }
 0x28a   :  { %v455_v8 = vpop.xlane.xlu0 %454 }
 0x28b   :  { %456 = vst.msk [vmem:[%s672_s5 + $0xc] sm:$0xf] %vm440_vm5, %v455_v8 }

</bundles_post_ra>
